<compile_context>
chip_gen: v6e
topology: v6e:2x2x1
jax: 0.10.0
libtpu: 0.0.40
codegen_flags: <defaults>
</compile_context>

<pallas_src>
import jax
import jax.numpy as jnp
from jax.experimental import pallas as pl
from jax.experimental.pallas import tpu as pltpu


def patch_embed_kernel(p_ref, w_ref, posb_ref, o_ref):
    # p_ref:    (TN, K)        patch rows for this tile (compute dtype, e.g. bf16)
    # w_ref:    (K, E_pad)     projection weight (resident)
    # posb_ref: (N_pad, E_pad) positional embedding + conv bias, f32 (resident)
    # o_ref:    (TN, E_pad)    output tile
    tn = o_ref.shape[0]
    acc = jnp.dot(p_ref[...], w_ref[...], preferred_element_type=jnp.float32)  # MXU
    row = pl.multiple_of(pl.program_id(1) * tn, tn)
    o_ref[...] = (acc + posb_ref[pl.ds(row, tn), :]).astype(o_ref.dtype)


def _round_up(x, m):
    return ((x + m - 1) // m) * m


def _choose_tile_n(N, B):
    """Sublane-aligned N tile; minimize padding, keep grid big enough for 2 TCs."""
    n16 = _round_up(N, 16)
    if n16 <= 256:
        tn = n16
        # Small N with small batch -> split so v7x's two TensorCores both get work.
        if B < 4 and n16 >= 64:
            tn = _round_up((n16 + 1) // 2, 16)
        return tn
    # Larger N: pick the tile that minimizes padded rows (wasted HBM traffic in a
    # memory-bound kernel), preferring the larger tile on ties.
    return min((512, 384, 256, 128), key=lambda t: (_round_up(N, t) - N, -t))


def patch_embedding(x, conv_w, conv_b, pos_embed, patch_size,
                    *, compute_dtype=jnp.bfloat16, out_dtype=None):
    """x: (B, C, H, W) NCHW. conv_w: (E, C, P, P). conv_b: (E,). pos: (1, N, E)."""
    B, C, H, W = x.shape
    E = conv_w.shape[0]
    P = patch_size
    assert H % P == 0 and W % P == 0, "H and W of image should be divisible by patch size"
    nh, nw = H // P, W // P
    N = nh * nw
    K = C * P * P
    out_dtype = x.dtype if out_dtype is None else out_dtype

    # --- host-side glue ---------------------------------------------------------
    # Cast FIRST so any materialized (B, N, K) intermediate is in the compute dtype
    # (half the HBM write bytes vs f32), then im2col via reshape/transpose:
    # (B, C, H, W) -> (B, C, nh, P, nw, P) -> (B, nh, nw, C, P, P) -> (B, N, K)
    patches = (x.astype(compute_dtype)
               .reshape(B, C, nh, P, nw, P)
               .transpose(0, 2, 4, 1, 3, 5)
               .reshape(B, N, K))

    # Conv weight (E, C, P, P) -> (K, E); fold bias into pos embedding.
    # posb stays f32 (it is fetched once, resident) so the add keeps full precision.
    w_mat = conv_w.reshape(E, K).T.astype(compute_dtype)                          # (K, E)
    posb = (pos_embed.reshape(N, E) + conv_b.reshape(1, E)).astype(jnp.float32)   # (N, E)

    # --- tiling: lane-dense E, sublane-aligned N tiles --------------------------
    E_pad = _round_up(E, 128)
    TN = _choose_tile_n(N, B)
    N_pad = _round_up(N, TN)
    nN = N_pad // TN

    if E_pad != E:
        w_mat = jnp.pad(w_mat, ((0, 0), (0, E_pad - E)))
        posb = jnp.pad(posb, ((0, 0), (0, E_pad - E)))
    if N_pad != N:
        patches = jnp.pad(patches, ((0, 0), (0, N_pad - N), (0, 0)))
        posb = jnp.pad(posb, ((0, N_pad - N), (0, 0)))

    grid = (B, nN)
    in_specs = [
        pl.BlockSpec((pl.Squeezed(), TN, K), lambda b, j: (b, j, 0)),   # patches (per step)
        pl.BlockSpec((K, E_pad), lambda b, j: (0, 0)),                  # weight (resident)
        pl.BlockSpec((N_pad, E_pad), lambda b, j: (0, 0)),              # pos+bias (resident)
    ]
    out_specs = pl.BlockSpec((pl.Squeezed(), TN, E_pad), lambda b, j: (b, j, 0))

    # --- VMEM budget: chip-derived cap (v7x: 64 MiB/TC, v5e default scope 16 MiB) -
    itm = jnp.dtype(compute_dtype).itemsize
    out_itm = jnp.dtype(out_dtype).itemsize
    need = (K * E_pad * itm                  # resident weight
            + N_pad * E_pad * 4              # resident pos+bias (f32)
            + 2 * TN * K * itm               # double-buffered patch tiles
            + 2 * TN * E_pad * out_itm)      # double-buffered output tiles
    try:
        vmem_cap = int(pltpu.get_tpu_info().vmem_capacity_bytes)
    except Exception:
        vmem_cap = 64 * 1024 * 1024
    vmem_limit = int(min(max(2 * need, 32 * 1024 * 1024), int(0.7 * vmem_cap)))
    vmem_limit = int(min(max(vmem_limit, need + (2 << 20)), vmem_cap))

    cost = pl.CostEstimate(
        flops=2 * B * N_pad * K * E_pad,
        transcendentals=0,
        bytes_accessed=int(B * N_pad * K * itm          # patches read
                           + K * E_pad * itm            # weight read (once)
                           + N_pad * E_pad * 4          # pos+bias read (once)
                           + B * N_pad * E_pad * out_itm),  # output write
    )

    out_padded = pl.pallas_call(
        patch_embed_kernel,
        out_shape=jax.ShapeDtypeStruct((B, N_pad, E_pad), out_dtype),
        grid_spec=pltpu.PrefetchScalarGridSpec(
            num_scalar_prefetch=0,
            grid=grid,
            in_specs=in_specs,
            out_specs=out_specs,
        ),
        compiler_params=pltpu.CompilerParams(
            dimension_semantics=("parallel", "parallel"),
            vmem_limit_bytes=vmem_limit,
            allow_input_fusion=[True, True, True],
        ),
        cost_estimate=cost,
    )(patches, w_mat, posb)

    # Skip the extra output-sized copy when no padding was introduced.
    if N_pad == N and E_pad == E:
        return out_padded
    return out_padded[:, :N, :E]


def patch_embedding_ref(x, conv_w, conv_b, pos_embed, patch_size):
    """Pure-JAX f32 reference (same math, no Pallas)."""
    B, C, H, W = x.shape
    E = conv_w.shape[0]
    P = patch_size
    nh, nw = H // P, W // P
    N = nh * nw
    K = C * P * P
    patches = x.reshape(B, C, nh, P, nw, P).transpose(0, 2, 4, 1, 3, 5).reshape(B, N, K)
    out = jnp.einsum("bnk,ek->bne", patches, conv_w.reshape(E, K)) + conv_b.reshape(1, 1, E)
    return out + pos_embed


if __name__ == "__main__":
    # Small config consistent with the module:
    #   InChannel_Size=4, Patch_Size=4, Embed_Size=32, Image_Width=16 -> N=16
    B, C, H, W = 2, 4, 16, 16
    P = 4
    E = 32
    N = (H // P) * (W // P)

    key = jax.random.PRNGKey(0)
    kx, kw, kb, kp = jax.random.split(key, 4)

    x = jax.random.normal(kx, (B, C, H, W), dtype=jnp.float32)
    conv_w = jax.random.normal(kw, (E, C, P, P), dtype=jnp.float32) * 0.02  # conv_proj.weight
    conv_b = jax.random.normal(kb, (E,), dtype=jnp.float32) * 0.02          # conv_proj.bias
    pos_embed = jax.random.normal(kp, (1, N, E), dtype=jnp.float32)         # pose_embedd

    out = jax.block_until_ready(patch_embedding(x, conv_w, conv_b, pos_embed, P))
    ref = patch_embedding_ref(x, conv_w, conv_b, pos_embed, P)

    assert out.shape == (B, N, E), out.shape
    # bf16 MXU operands with f32 accumulation -> slightly loosened tolerance vs f32 ref.
    assert jnp.allclose(out, ref, atol=2e-2, rtol=2e-2), "mismatch vs reference"
    print("KERNEL_OK")
</pallas_src>

<mosaic_0001>
module attributes {stable_mosaic.version = 11 : i64} {
  func.func @patch_embed_kernel(%arg0: i32, %arg1: i32, %arg2: memref<1x16x64xbf16, #tpu.memory_space<vmem>>, %arg3: memref<64x128xbf16, #tpu.memory_space<vmem>>, %arg4: memref<16x128xf32, #tpu.memory_space<vmem>>, %arg5: memref<1x16x128xf32, #tpu.memory_space<vmem>>) attributes {dimension_semantics = [#tpu.dimension_semantics<parallel>, #tpu.dimension_semantics<parallel>], iteration_bounds = array<i64: 2, 1>, scalar_prefetch = 0 : i64, scratch_operands = 0 : i64, tpu.core_type = #tpu.core_type<tc>, window_params = [{transform_indices = @transform_0, window_bounds = array<i64: 1, 16, 64>}, {pipeline_mode = #tpu.pipeline_mode<synchronous>, transform_indices = @transform_1, window_bounds = array<i64: 64, 128>}, {pipeline_mode = #tpu.pipeline_mode<synchronous>, transform_indices = @transform_2, window_bounds = array<i64: 16, 128>}, {transform_indices = @transform_3, window_bounds = array<i64: 1, 16, 128>}]} {
    %c0 = arith.constant 0 : index
    %c0_0 = arith.constant 0 : index
    %c0_1 = arith.constant 0 : index
    %0 = vector.load %arg2[%c0, %c0_0, %c0_1] : memref<1x16x64xbf16, #tpu.memory_space<vmem>>, vector<1x16x64xbf16>
    %1 = vector.shape_cast %0 : vector<1x16x64xbf16> to vector<16x64xbf16>
    %c0_2 = arith.constant 0 : index
    %c0_3 = arith.constant 0 : index
    %2 = vector.load %arg3[%c0_2, %c0_3] : memref<64x128xbf16, #tpu.memory_space<vmem>>, vector<64x128xbf16>
    %cst = arith.constant dense<0.000000e+00> : vector<16x128xf32>
    %3 = tpu.matmul %1, %2, %cst {dimension_numbers = #tpu.dot_dimension_numbers<[1], [0], [0], [1], [0, 0, 1, 1], [], []>} : vector<16x64xbf16>, vector<64x128xbf16>, vector<16x128xf32> -> vector<16x128xf32>
    %c16_i32 = arith.constant 16 : i32
    %4 = arith.muli %arg1, %c16_i32 : i32
    %5 = tpu.assume_multiple %4, 16 : i32
    %6 = arith.index_cast %5 : i32 to index
    %c0_4 = arith.constant 0 : index
    %7 = vector.load %arg4[%6, %c0_4] : memref<16x128xf32, #tpu.memory_space<vmem>>, vector<16x128xf32>
    %8 = arith.addf %3, %7 : vector<16x128xf32>
    %c0_5 = arith.constant 0 : index
    %c0_6 = arith.constant 0 : index
    %c0_7 = arith.constant 0 : index
    %9 = vector.load %arg5[%c0_5, %c0_6, %c0_7] : memref<1x16x128xf32, #tpu.memory_space<vmem>>, vector<1x16x128xf32>
    %10 = vector.shape_cast %9 : vector<1x16x128xf32> to vector<16x128xf32>
    %11 = vector.shape_cast %8 : vector<16x128xf32> to vector<1x16x128xf32>
    tpu.vector_store %arg5[%c0_5, %c0_6, %c0_7], %11 {strides = array<i32>} : memref<1x16x128xf32, #tpu.memory_space<vmem>>, vector<1x16x128xf32>,
    return
  }
  func.func @transform_0(%arg0: i32, %arg1: i32) -> (i32, i32, i32) {
    %c0_i32 = arith.constant 0 : i32
    %c0_i32_0 = arith.constant 0 : i32
    return %arg0, %arg1, %c0_i32 : i32, i32, i32
  }
  func.func @transform_1(%arg0: i32, %arg1: i32) -> (i32, i32) {
    %c0_i32 = arith.constant 0 : i32
    %c0_i32_0 = arith.constant 0 : i32
    %c0_i32_1 = arith.constant 0 : i32
    return %c0_i32, %c0_i32_0 : i32, i32
  }
  func.func @transform_2(%arg0: i32, %arg1: i32) -> (i32, i32) {
    %c0_i32 = arith.constant 0 : i32
    %c0_i32_0 = arith.constant 0 : i32
    %c0_i32_1 = arith.constant 0 : i32
    return %c0_i32, %c0_i32_0 : i32, i32
  }
  func.func @transform_3(%arg0: i32, %arg1: i32) -> (i32, i32, i32) {
    %c0_i32 = arith.constant 0 : i32
    %c0_i32_0 = arith.constant 0 : i32
    return %arg0, %arg1, %c0_i32 : i32, i32, i32
  }
}

</mosaic_0001>

<bundles_post_ra>
// kernel: tpu_custom_call.1
= control target key start
LH: loop header
LB: loop body
LE: loop exit
PB: predicated region body
PF: predicated region fallthrough
CT: control target
= control target key end

     0   :  { %8 = vsyncpa [#allocation3], 0  ;;  %s986_s0 = inlined_call_operand.hbm [shape: bf16[2,16,64], index: 0, kind: input, shape index: {}]   ;;  %s987_s1 = inlined_call_operand.hbm [shape: bf16[64,128], index: 1, kind: input, shape index: {}]   ;;  %s988_s2 = inlined_call_operand.hbm [shape: f32[16,128], index: 2, kind: input, shape index: {}]   ;;  %s989_s3 = inlined_call_operand.hbm [shape: f32[2,16,128], index: 3, kind: output, shape index: {}]  }
   0x1   :  { %10 = vsyncpa [#allocation3 + $0x1], 0 }
   0x2   :  { %11 = vsyncpa [#allocation6], 0 }
   0x3   :  { %12 = vsyncpa [#allocation4], 0 }
   0x4   :  { %14 = vsyncpa [#allocation4 + $0x1], 0  ;;  %s791_s12 = smov 0   ;;  %s793_s13 = smov 0  }
   0x5   :  { %s795_s14 = smov 0   ;;  %s797_s15 = smov 0  }
   0x6   :  { %s799_s16 = smov 0   ;;  %s801_s17 = smov 0  }
   0x7 LB: > { %s453_s18 = sadd.s32 4294967295, %s757_s17   ;;  %s454_s19 = sadd.s32 4294967294, %s757_s17   ;;  %s757_s17 = sphi %s801_s17, %s20_s17   ;;  %s753_s16 = sphi %s799_s16, %s1006_s16   ;;  %s749_s15 = sphi %s797_s15, %s1005_s15   ;;  %s745_s14 = sphi %s795_s14, %s1004_s14   ;;  %s741_s13 = sphi %s793_s13, %s1003_s13   ;;  %s737_s12 = sphi %s791_s12, %s1002_s12  }
   0x8   : > { %p54_p0 = scmp.ne.s32.totalorder %s741_s13, %s737_s12  ;;  %p825_p1 = scmp.eq.s32.totalorder %s453_s18, 0 }
   0x9   : > { %p829_p2 = scmp.eq.s32.totalorder %s453_s18, 1  ;;  %p128_p3 = scmp.eq.s32.totalorder %s454_s19, 1 }
   0xa   : > { %p835_p4 = por %p825_p1, %p54_p0  ;;  %p455_p5 = scmp.ge.s32.totalorder %s757_s17, 1 }
   0xb   : > { %p840_p6 = por %p128_p3, %p54_p0  ;;  %p135_p7 = scmp.lt.s32.totalorder %s757_s17, 3 }
   0xc   : > { %s759_s25 = smov [#allocation5]   ;;  %s760_s28 = smov [#allocation7]  }
   0xd   : > { %s994_s23 = scalar_select %p840_p6, 1, 0 }
   0xe   : > { %p845_p8 = pnand %p455_p5, %p135_p7  ;;  %s147_s26 = sshll.u32 %s759_s25, 4  ;;  %s148_s26 = int_to_ptr.vmem [resolvable:$true] %s147_s26 }
   0xf   : > { %s160_s29 = sshll.u32 %s760_s28, 4  ;;  %s604_s30 = scalar_lea.vmem %s148_s26, 512  ;;  %s161_s29 = int_to_ptr.vmem [resolvable:$true] %s160_s29 }
  0x10   : > { %p509_p9 = pneg %p845_p8  ;;  %p605_p13 = scmp.ne.s32.totalorder %s148_s26, %s604_s30 }
  0x11   : > { %p612_p5 = scmp.lt.s32.totalorder %s148_s26, %s148_s26  ;;  %p613_p7 = scmp.lt.s32.totalorder %s604_s30, %s604_s30 }
  0x12   : > { %p854_p11 = pnand %p509_p9, %p825_p1 }
  0x13   : > { %p614_p10 = por %p613_p7, %p612_p5 }
  0x14   : > { %p595_p12 = pneg %p854_p11 }
  0x16   : > { %p607_p0 = pnand %p605_p13, %p595_p12 }
  0x18   : > { %p608_p3 = pneg %p607_p0 }
  0x1a   : > { %p615_p9 = pnand %p614_p10, %p608_p3 }
  0x1c   : > { %618 = shalt.err (!%p615_p9)
}
  0x1d   : > { %s990_s4 = smov 64   ;;  %s762_s5 = smov 4  }
  0x1e   : > { %512 = dma.hbm_to_vmem [thread:$0]  (!%p854_p11), %s987_s1, 512, %s148_s26, [#allocation6], %s990_s4, %s990_s4, %s762_s5  }
  0x1f   : > { %s630_s8 = scalar_lea.vmem %s161_s29, 256  ;;  %p638_p10 = scmp.lt.s32.totalorder %s161_s29, %s161_s29 }
  0x20   : > { %p631_p13 = scmp.ne.s32.totalorder %s161_s29, %s630_s8  ;;  %p639_p3 = scmp.lt.s32.totalorder %s630_s8, %s630_s8 }
  0x22   : > { %p633_p0 = pnand %p631_p13, %p595_p12  ;;  %p640_p7 = por %p639_p3, %p638_p10 }
  0x24   : > { %p634_p5 = pneg %p633_p0 }
  0x26   : > { %p641_p9 = pnand %p640_p7, %p634_p5 }
  0x28   : > { %644 = shalt.err (!%p641_p9)
}
  0x29   : > { %s763_s9 = smov 128   ;;  %s764_s10 = smov 8  }
  0x2a   : > { %515 = dma.hbm_to_vmem [thread:$0]  (!%p854_p11), %s988_s2, 256, %s161_s29, [#allocation6], %s763_s9, %s763_s9, %s764_s10  }
  0x2b   : > { %s32_s19 = sadd.s32 1, %s753_s16  ;;  %s41_s25 = sadd.s32 1, %s745_s14 }
  0x2c   : > { %p34_p12 = scmp.ge.s32.totalorder %s32_s19, 2  ;;  %p48_p13 = scmp.ne.s32.totalorder %s745_s14, %s741_s13 }
  0x2d   : > { %p49_p0 = scmp.eq.s32.totalorder %s757_s17, 0  ;;  %p526_p5 = scmp.lt.s32.totalorder %s757_s17, 2 }
  0x2e   : > { %s1008_s19 = smov (%p34_p12, %s32_s19), 0  ;;  %p889_p3 = por %p829_p2, %p48_p13 }
  0x2f   : > { %p50_p10 = por %p49_p0, %p48_p13  ;;  %s36_s27 = ssub.s32 %s753_s16, %s1008_s19 }
  0x30   : > { %s174_s28 = sand.u32 1, %s745_s14   ;;  %p39_p7 = scmp.eq.s32.totalorder %s36_s27, 0 }
  0x31   : > { %s459_s29 = sshll.u32 %s174_s28, 3  ;;  %s478_s30 = sshll.u32 %s753_s16, 7 }
  0x32   : > { %s898_s6 = scalar_select %p39_p7, %s745_s14, %s41_s25  }
  0x33   : > { %s186_s9 = scalar_lea.hbm %s986_s0, %s478_s30  ;;  %s178_s10 = scalar_lea.vmem [#allocation2], %s459_s29 }
  0x34   : > { %s187_s11 = sshll.u32 %s178_s10, 4  ;;  %p905_p11 = pnand %p526_p5, %p50_p10  ;;  %s188_s11 = int_to_ptr.vmem [resolvable:$true] %s187_s11 }
  0x35   : > { %s175_s18 = scalar_lea.sflag [#allocation3], %s174_s28  ;;  %s658_s27 = scalar_lea.vmem %s188_s11, 128 }
  0x36   : > { %p647_p2 = pneg %p905_p11  ;;  %p659_p9 = scmp.ne.s32.totalorder %s188_s11, %s658_s27 }
  0x37   : > { %s765_s25 = smov [#allocation2]  }
  0x38   : > { %p661_p12 = pnand %p659_p9, %p647_p2  ;;  %s663_s4 = sshll.u32 %s765_s25, 4  ;;  %s664_s4 = int_to_ptr.vmem [resolvable:$false] %s663_s4 }
  0x39   : > { %s665_s30 = scalar_lea.vmem %s664_s4, 256  ;;  %p666_p0 = scmp.lt.s32.totalorder %s188_s11, %s664_s4 }
  0x3a   : > { %p662_p13 = pneg %p661_p12  ;;  %p667_p7 = scmp.lt.s32.totalorder %s665_s30, %s658_s27 }
  0x3c   : > { %p668_p6 = por %p667_p7, %p666_p0 }
  0x3e   : > { %p669_p5 = pnand %p668_p6, %p662_p13 }
  0x40   : > { %672 = shalt.err (!%p669_p5)
}
  0x41   : > { %s999_s29 = smov 64   ;;  %199 = sbr.rel (%p845_p8) target bundleno = 303 (0x12f), region = 32 }
  0x42   : > { %519 = dma.hbm_to_vmem [thread:$0]  (!%p905_p11), %s186_s9, 128, %s188_s11, %s175_s18, %s999_s29, %s999_s29, %s762_s5  }
  0x43   : > { %s919_s28 = sand.u32 (!%p845_p8), 1, %s741_s13  }
  0x44   : > { %s463_s4 = sshll.u32 (!%p845_p8), %s919_s28, 3  ;;  %s202_s7 = scalar_lea.sflag (!%p845_p8), [#allocation3], %s919_s28 }
  0x45   : > { %s205_s8 = scalar_lea.vmem (!%p845_p8), [#allocation2], %s463_s4 }
  0x46   : > { %724 = dma.done.wait (%p835_p4), %s202_s7, 128  }
  0x47   : > { %726 = vsyncadd (%p835_p4), %s202_s7, 4294967168 }
  0x48   : > { %728 = dma.done.wait (%p825_p1), [#allocation6], 768  }
  0x49   : > { %730 = vsyncadd (%p825_p1), [#allocation6], 4294966528  ;;  %v766_v0 = vmov 0.0   ;;  %vm767_vm0 = vmmov 0   ;;  %v588_v1 = vld [vmem:[#allocation5 + $0x18] sm:$0xff]   ;;  %v589_v2 = vld [vmem:[#allocation5 + $0x10] sm:$0xff]  }
  0x4a   : > { %485 = vmatprep.subr.bf16.mxu0 %v766_v0  ;;  %493 = vmatprep.mubr.msk.bf16.mxu0 %vm767_vm0, %v766_v0  ;;  %v590_v3 = vld [vmem:[#allocation5 + $0x8] sm:$0xff]   ;;  %v591_v4 = vld [vmem:[#allocation5] sm:$0xff]   ;;  %v592_v5 = vld [vmem:[%s205_s8] sm:$0xff]   ;;  %vm282_vm1 = vcmask 523264   ;;  %s466_s20 = sshll.u32 %s919_s28, 4  ;;  %s479_s5 = sshll.u32 %s749_s15, 8 }
  0x4b   : > { %486 = vmatpush3.bf16.msra.mxu0 %v588_v1  ;;  %v251_v6 = vld [vmem:[#allocation7] sm:$0xff]  ;;  %s235_s22 = scalar_lea.vmem [#allocation8], %s466_s20  ;;  %v252_v10 = vld [vmem:[#allocation7 + $0x8] sm:$0xff]  ;;  %s938_s11 = scalar_lea.hbm %s989_s3, %s479_s5 }
  0x4c   : > { %487 = vmatprep.subr.bf16.mxu0 %v766_v0  ;;  %s345_s24 = sshll.u32 %s235_s22, 4  ;;  %s330_s21 = scalar_lea.sflag [#allocation4], %s919_s28  ;;  %s933_s24 = int_to_ptr.vmem [resolvable:$true] %s345_s24 }
  0x4d   : > { %s673_s18 = scalar_lea.vmem %s933_s24, 256  ;;  %s768_s15 = smov [#allocation8]  }
  0x4e   : > { %p674_p1 = scmp.ne.s32.totalorder %s933_s24, %s673_s18  ;;  %s677_s27 = sshll.u32 %s768_s15, 4  ;;  %s678_s27 = int_to_ptr.vmem [resolvable:$false] %s677_s27 }
  0x4f   : > { %488 = vmatpush3.bf16.msra.mxu0 %v589_v2  ;;  %s679_s25 = scalar_lea.vmem %s678_s27, 512  ;;  %p680_p8 = scmp.lt.s32.totalorder %s933_s24, %s678_s27 }
  0x50   : > { %489 = vmatprep.subr.bf16.mxu0 %v766_v0  ;;  %p675_p4 = pnand %p674_p1, %p889_p3  ;;  %p681_p10 = scmp.lt.s32.totalorder %s679_s25, %s673_s18 }
  0x52   : > { %p676_p6 = pneg %p675_p4  ;;  %p682_p11 = por %p681_p10, %p680_p8 }
  0x53   : > { %490 = vmatpush3.bf16.msra.mxu0 %v590_v3 }
  0x54   : > { %491 = vmatprep.subr.bf16.mxu0 %v766_v0  ;;  %p683_p2 = pnand %p682_p11, %p676_p6 }
  0x57   : > { %492 = vmatpush3.bf16.msra.mxu0 %v591_v4 }
  0x5a   : > { %494 = vmatmul.mubr.msk.bf16.vlgmr.msra.gmra.mxu0 %vm282_vm1, %v592_v5 }
 0x11a   : > { %v320_v7 = vpop.f32.mrf.mxu0 }
 0x11b   : > { %v321_v8 = vadd.f32 %v320_v7, %v251_v6 }
 0x11c   : > { %v495_v9 = vpop.f32.mrf.mxu0 }
 0x11d   : > { %327 = vst [vmem:[%s235_s22] sm:$0xff] %v321_v8 }
 0x11e   : > { %v323_v11 = vpop.f32.mrf.mxu0 }
 0x11f   : > { %v324_v12 = vadd.f32 %v323_v11, %v252_v10 }
 0x120   : > { %v496_v13 = vpop.f32.mrf.mxu0 }
 0x121   : > { %328 = vst [vmem:[%s235_s22 + $0x8] sm:$0xff] %v324_v12 }
 0x122   : > { %686 = shalt.err (!%p683_p2)
}
 0x123   : > { %s687_s30 = scalar_lea.hbm %s938_s11, 256  ;;  %s691_s7 = scalar_lea.hbm %s989_s3, 512 }
 0x124   : > { %p688_p9 = scmp.ne.s32.totalorder %s938_s11, %s687_s30  ;;  %p692_p0 = scmp.lt.s32.totalorder %s938_s11, %s989_s3 }
 0x125   : > { %p693_p7 = scmp.lt.s32.totalorder %s691_s7, %s687_s30 }
 0x126   : > { %p689_p12 = pnand %p688_p9, %p889_p3 }
 0x127   : > { %p694_p5 = por %p693_p7, %p692_p0 }
 0x128   : > { %p690_p13 = pneg %p689_p12 }
 0x12a   : > { %p695_p1 = pnand %p694_p5, %p690_p13 }
 0x12c   : > { %698 = shalt.err (!%p695_p1)
}
 0x12d   : > { %s769_s22 = smov 128   ;;  %s770_s5 = smov 8  }
 0x12e   : > { %507 = dma.vmem_to_hbm [thread:$0]  (%p889_p3), %s933_s24, 256, %s938_s11, %s330_s21, %s769_s22, %s769_s22, %s770_s5  }
 0x12f PF: > { %s360_s9 = sand.u32 1, %s737_s12   ;;  %p1000_p4 = scmp.ne.s32.totalorder %s994_s23, 0 }
 0x130   : > { %p1001_p6 = scmp.ge.s32.totalorder %s757_s17, 2  ;;  %s361_s10 = scalar_lea.sflag [#allocation4], %s360_s9 }
 0x132   : > { %p521_p8 = pnand %p1001_p6, %p1000_p4 }
 0x134   : > { %p522_p10 = pneg %p521_p8 }
 0x136   : > { %732 = dma.done.wait (%p522_p10), %s361_s10, 256  }
 0x137   : > { %734 = vsyncadd (%p522_p10), %s361_s10, 4294967040  ;;  %s20_s17 = sadd.s32 1, %s757_s17   ;;  %s1002_s12 = smov %s741_s13 }
 0x138   : > { %p17_p11 = scmp.ge.s32.totalorder %s20_s17, 4   ;;  %s1003_s13 = smov %s745_s14 }
 0x139   : > { %s1004_s14 = smov %s898_s6  ;;  %s1005_s15 = smov %s753_s16 }
 0x13a   : > { %s1006_s16 = smov %s1008_s19  ;;  %19 = sbr.rel (!%p17_p11) target bundleno = 7 (0x7), region = 86 }
 0x13f   :  { %366 = vsyncpa [#allocation3], 1 }
 0x140   :  { %368 = vsyncpa [#allocation3 + $0x1], 1 }
 0x141   :  { %369 = vsyncpa [#allocation6], 1 }
 0x142   :  { %370 = vsyncpa [#allocation4], 1 }
 0x143   :  { %372 = vsyncpa [#allocation4 + $0x1], 1 }

</bundles_post_ra>
